<compile_context>
chip_gen: v7x
topology: tpu7x:2x2x1
jax: 0.10.0
libtpu: 0.0.40
codegen_flags: <defaults>
</compile_context>

<pallas_src>
import functools

import jax
import jax.numpy as jnp
from jax.experimental import pallas as pl
from jax.experimental.pallas import tpu as pltpu


def _round_up(x, m):
    return ((x + m - 1) // m) * m


# ----------------------------------------------------------------------------
# Kernel: one (tb, th) output tile of   tanh(x @ Uw + b) + hidden @ Vw
# ----------------------------------------------------------------------------
def _rnn_cell_kernel(x_ref, h_ref, uw_ref, ub_ref, vw_ref, out_ref):
    wdt = uw_ref.dtype
    # U(x): (tb, I) @ (I, th) -> (tb, th), f32 accumulate on the MXU.
    u = jnp.dot(x_ref[...].astype(wdt), uw_ref[...],
                preferred_element_type=jnp.float32)
    act = jnp.tanh(u + ub_ref[...])                     # f32 VPU + EUP
    # V_sn(hidden): (tb, H) @ (H, th) -> (tb, th), no bias.
    v = jnp.dot(h_ref[...].astype(wdt), vw_ref[...],
                preferred_element_type=jnp.float32)
    out_ref[...] = (act + v).astype(out_ref.dtype)      # lane-dense store


# ----------------------------------------------------------------------------
# One-time parameter preparation (hoisted off the hot path).
# ----------------------------------------------------------------------------
def spectral_normalize(w, n_iters=5):
    """Emulate torch.nn.utils.spectral_norm: divide w by its largest singular
    value estimated with power iteration.  Deterministic u init (torch uses a
    random buffer), sigma = u^T W v with the freshest u, v — same update order
    as torch, not bit-identical because of the init and iteration count."""
    H_out, _ = w.shape
    u = jnp.ones((H_out,), jnp.float32) / jnp.sqrt(H_out)
    v = None
    for _ in range(n_iters):
        v = w.T @ u
        v = v / (jnp.linalg.norm(v) + 1e-12)
        u = w @ v
        u = u / (jnp.linalg.norm(u) + 1e-12)
    sigma = u @ (w @ v)
    return w / sigma


def prepare_params(u_weight, u_bias, v_weight, *, n_power_iters=5,
                   compute_dtype=jnp.float32):
    """u_weight: (H, I), u_bias: (H,), v_weight: (H, H)  [PyTorch layout].

    Returns kernel-ready params: transposed to (K, N), output axis zero-padded
    to a multiple of 128 lanes, spectral norm applied to V.  Call ONCE; reuse
    across all forward steps."""
    H, I = u_weight.shape
    H_pad = _round_up(H, 128)

    v_sn = spectral_normalize(v_weight.astype(jnp.float32), n_power_iters)

    uw_t = jnp.zeros((I, H_pad), compute_dtype)
    uw_t = uw_t.at[:, :H].set(u_weight.T.astype(compute_dtype))
    vw_t = jnp.zeros((H, H_pad), compute_dtype)
    vw_t = vw_t.at[:, :H].set(v_sn.T.astype(compute_dtype))
    ub = jnp.zeros((1, H_pad), jnp.float32)
    ub = ub.at[0, :H].set(u_bias.astype(jnp.float32))

    return {"uw_t": uw_t, "ub": ub, "vw_t": vw_t, "hid_size": H}


# ----------------------------------------------------------------------------
# Forward (single cell step, matching RNNCellLT.forward semantics).
# ----------------------------------------------------------------------------
@functools.partial(jax.jit, static_argnames=("hid_size",))
def _forward(x, hidden, uw_t, ub, vw_t, *, hid_size):
    B, I = x.shape
    H = hid_size
    H_pad = uw_t.shape[1]

    # Batch tile: full batch if small (rounded to a sublane multiple of 8),
    # 128-row tiles if large.  Hidden tile: 128 lanes (H_pad % 128 == 0).
    tb = 128 if B >= 128 else _round_up(B, 8)
    B_pad = _round_up(B, tb)
    th = 128

    x_p = x if B_pad == B else jnp.pad(x, ((0, B_pad - B), (0, 0)))
    h_p = hidden if B_pad == B else jnp.pad(hidden, ((0, B_pad - B), (0, 0)))

    grid = (B_pad // tb, H_pad // th)
    out = pl.pallas_call(
        _rnn_cell_kernel,
        out_shape=jax.ShapeDtypeStruct((B_pad, H_pad), jnp.float32),
        grid=grid,
        in_specs=[
            pl.BlockSpec((tb, I), lambda i, j: (i, 0)),   # x: tiled on batch
            pl.BlockSpec((tb, H), lambda i, j: (i, 0)),   # hidden: tiled on batch
            pl.BlockSpec((I, th), lambda i, j: (0, j)),   # U^T: tiled on out lanes
            pl.BlockSpec((1, th), lambda i, j: (0, j)),   # bias
            pl.BlockSpec((H, th), lambda i, j: (0, j)),   # V_sn^T: tiled on out lanes
        ],
        out_specs=pl.BlockSpec((tb, th), lambda i, j: (i, j)),
        compiler_params=pltpu.CompilerParams(
            dimension_semantics=("parallel", "parallel")),
    )(x_p, h_p, uw_t, ub, vw_t)

    return out[:B, :H]


def rnn_cell_lt_forward(x, hidden, params):
    """x: (B, I), hidden: (B, H) or None (-> zeros, as in the PyTorch forward)."""
    if hidden is None:
        hidden = jnp.zeros((x.shape[0], params["hid_size"]), jnp.float32)
    return _forward(x, hidden, params["uw_t"], params["ub"], params["vw_t"],
                    hid_size=params["hid_size"])


# TODO(synk): reset_parameters (henaff/cayley/random-orthogonal init via expm)
# is parameter-initialization glue with no forward-path Pallas equivalent.

if __name__ == "__main__":
    key = jax.random.PRNGKey(0)
    k_x, k_h, k_uw, k_ub, k_vw = jax.random.split(key, 5)

    batch, inp_size, hid_size = 8, 16, 32

    # Deterministic synthetic parameters (PyTorch layout: (out, in)).
    u_weight = jax.random.normal(k_uw, (hid_size, inp_size), jnp.float32) * 0.1
    u_bias = jax.random.normal(k_ub, (hid_size,), jnp.float32) * 0.1
    v_weight_raw = jax.random.normal(k_vw, (hid_size, hid_size), jnp.float32) * 0.1

    # One-time prep: spectral norm + transpose + lane padding (off hot path).
    params = prepare_params(u_weight, u_bias, v_weight_raw)

    x = jax.random.normal(k_x, (batch, inp_size), jnp.float32)
    # Nonzero hidden so the spectral-normalized V matmul path is validated.
    hidden = jax.random.normal(k_h, (batch, hid_size), jnp.float32)

    h = jax.block_until_ready(rnn_cell_lt_forward(x, hidden, params))
    assert h.shape == (batch, hid_size)

    # Also exercise the hidden=None default path.
    h0 = jax.block_until_ready(rnn_cell_lt_forward(x, None, params))

    # Reference check in plain JAX.
    v_sn = spectral_normalize(v_weight_raw)
    ref = jnp.tanh(x @ u_weight.T + u_bias) + hidden @ v_sn.T
    ref0 = jnp.tanh(x @ u_weight.T + u_bias)
    assert jnp.allclose(h, ref, atol=1e-4, rtol=1e-4), "mismatch vs reference"
    assert jnp.allclose(h0, ref0, atol=1e-4, rtol=1e-4), "mismatch (hidden=None)"

    print("KERNEL_OK")
</pallas_src>

<mosaic_0001>
module attributes {stable_mosaic.version = 11 : i64} {
  func.func @_rnn_cell_kernel(%arg0: i32, %arg1: i32, %arg2: memref<8x16xf32, #tpu.memory_space<vmem>>, %arg3: memref<8x32xf32, #tpu.memory_space<vmem>>, %arg4: memref<16x128xf32, #tpu.memory_space<vmem>>, %arg5: memref<1x128xf32, #tpu.memory_space<vmem>>, %arg6: memref<32x128xf32, #tpu.memory_space<vmem>>, %arg7: memref<8x128xf32, #tpu.memory_space<vmem>>) attributes {dimension_semantics = [#tpu.dimension_semantics<parallel>, #tpu.dimension_semantics<parallel>], iteration_bounds = array<i64: 1, 1>, scalar_prefetch = 0 : i64, scratch_operands = 0 : i64, tpu.core_type = #tpu.core_type<tc>, window_params = [{transform_indices = @transform_0, window_bounds = array<i64: 8, 16>}, {transform_indices = @transform_1, window_bounds = array<i64: 8, 32>}, {transform_indices = @transform_2, window_bounds = array<i64: 16, 128>}, {transform_indices = @transform_3, window_bounds = array<i64: 1, 128>}, {transform_indices = @transform_4, window_bounds = array<i64: 32, 128>}, {transform_indices = @transform_5, window_bounds = array<i64: 8, 128>}]} {
    %c0 = arith.constant 0 : index
    %c0_0 = arith.constant 0 : index
    %0 = vector.load %arg2[%c0, %c0_0] : memref<8x16xf32, #tpu.memory_space<vmem>>, vector<8x16xf32>
    %c0_1 = arith.constant 0 : index
    %c0_2 = arith.constant 0 : index
    %1 = vector.load %arg4[%c0_1, %c0_2] : memref<16x128xf32, #tpu.memory_space<vmem>>, vector<16x128xf32>
    %cst = arith.constant dense<0.000000e+00> : vector<8x128xf32>
    %2 = tpu.matmul %0, %1, %cst {dimension_numbers = #tpu.dot_dimension_numbers<[1], [0], [0], [1], [0, 0, 1, 1], [], []>} : vector<8x16xf32>, vector<16x128xf32>, vector<8x128xf32> -> vector<8x128xf32>
    %c0_3 = arith.constant 0 : index
    %c0_4 = arith.constant 0 : index
    %3 = vector.load %arg5[%c0_3, %c0_4] : memref<1x128xf32, #tpu.memory_space<vmem>>, vector<1x128xf32>
    %4 = vector.broadcast %3 : vector<1x128xf32> to vector<8x128xf32>
    %5 = arith.addf %2, %4 : vector<8x128xf32>
    %6 = math.tanh %5 : vector<8x128xf32>
    %c0_5 = arith.constant 0 : index
    %c0_6 = arith.constant 0 : index
    %7 = vector.load %arg3[%c0_5, %c0_6] : memref<8x32xf32, #tpu.memory_space<vmem>>, vector<8x32xf32>
    %c0_7 = arith.constant 0 : index
    %c0_8 = arith.constant 0 : index
    %8 = vector.load %arg6[%c0_7, %c0_8] : memref<32x128xf32, #tpu.memory_space<vmem>>, vector<32x128xf32>
    %cst_9 = arith.constant dense<0.000000e+00> : vector<8x128xf32>
    %9 = tpu.matmul %7, %8, %cst_9 {dimension_numbers = #tpu.dot_dimension_numbers<[1], [0], [0], [1], [0, 0, 1, 1], [], []>} : vector<8x32xf32>, vector<32x128xf32>, vector<8x128xf32> -> vector<8x128xf32>
    %10 = arith.addf %6, %9 : vector<8x128xf32>
    %c0_10 = arith.constant 0 : index
    %c0_11 = arith.constant 0 : index
    %11 = vector.load %arg7[%c0_10, %c0_11] : memref<8x128xf32, #tpu.memory_space<vmem>>, vector<8x128xf32>
    tpu.vector_store %arg7[%c0_10, %c0_11], %10 {strides = array<i32>} : memref<8x128xf32, #tpu.memory_space<vmem>>, vector<8x128xf32>,
    return
  }
  func.func @transform_0(%arg0: i32, %arg1: i32) -> (i32, i32) {
    %c0_i32 = arith.constant 0 : i32
    %c0_i32_0 = arith.constant 0 : i32
    return %arg0, %c0_i32 : i32, i32
  }
  func.func @transform_1(%arg0: i32, %arg1: i32) -> (i32, i32) {
    %c0_i32 = arith.constant 0 : i32
    %c0_i32_0 = arith.constant 0 : i32
    return %arg0, %c0_i32 : i32, i32
  }
  func.func @transform_2(%arg0: i32, %arg1: i32) -> (i32, i32) {
    %c0_i32 = arith.constant 0 : i32
    %c0_i32_0 = arith.constant 0 : i32
    return %c0_i32, %arg1 : i32, i32
  }
  func.func @transform_3(%arg0: i32, %arg1: i32) -> (i32, i32) {
    %c0_i32 = arith.constant 0 : i32
    %c0_i32_0 = arith.constant 0 : i32
    return %c0_i32, %arg1 : i32, i32
  }
  func.func @transform_4(%arg0: i32, %arg1: i32) -> (i32, i32) {
    %c0_i32 = arith.constant 0 : i32
    %c0_i32_0 = arith.constant 0 : i32
    return %c0_i32, %arg1 : i32, i32
  }
  func.func @transform_5(%arg0: i32, %arg1: i32) -> (i32, i32) {
    %c0_i32 = arith.constant 0 : i32
    return %arg0, %arg1 : i32, i32
  }
}

</mosaic_0001>

<bundles_post_ra>
// kernel: _forward.1
= control target key start
LH: loop header
LB: loop body
LE: loop exit
PB: predicated region body
PF: predicated region fallthrough
CT: control target
= control target key end

     0   :  { %10 = vsyncpa [#allocation3], 0  ;;  %s526_s0 = inlined_call_operand.hbm [shape: f32[8,16], index: 0, kind: input, shape index: {}]   ;;  %s527_s1 = inlined_call_operand.hbm [shape: f32[8,32], index: 1, kind: input, shape index: {}]   ;;  %s528_s2 = inlined_call_operand.hbm [shape: f32[16,128], index: 2, kind: input, shape index: {}]   ;;  %s529_s3 = inlined_call_operand.vmem [shape: f32[1,128], index: 3, kind: input, shape index: {}]   ;;  %s530_s4 = inlined_call_operand.hbm [shape: f32[32,128], index: 4, kind: input, shape index: {}]   ;;  %s531_s5 = inlined_call_operand.hbm [shape: f32[8,128], index: 5, kind: output, shape index: {}]  }
   0x1   :  { %11 = vsyncpa [#allocation6], 0 }
   0x2   :  { %12 = vsyncpa [#allocation9], 0 }
   0x3   :  { %13 = vsyncpa [#allocation4], 0  ;;  %s423_s18 = smov [#allocation5]   ;;  %s424_s20 = smov [#allocation2]  }
   0x4   :  { %s30_s19 = sshll.u32 %s423_s18, 4  ;;  %s20_s21 = sshll.u32 %s424_s20, 4  ;;  %s31_s19 = int_to_ptr.vmem [resolvable:$true] %s30_s19  ;;  %s21_s21 = int_to_ptr.vmem [resolvable:$true] %s20_s21 }
   0x5   :  { %s305_s24 = scalar_lea.hbm %s527_s1, 128 }
   0x6   :  { %p306_p0 = scmp.ne.s32.totalorder %s527_s1, %s305_s24  ;;  %p309_p1 = scmp.lt.u32.totalorder %s305_s24, %s527_s1 }
   0x8   :  { %p311_p2 = pnand %p309_p1, %p306_p0 }
   0xa   :  { %314 = shalt.err (!%p311_p2)
}
   0xb   :  { %s315_s29 = scalar_lea.vmem %s31_s19, 128  ;;  %p320_p4 = scmp.lt.s32.totalorder %s31_s19, %s31_s19 }
   0xc   :  { %p316_p3 = scmp.ne.s32.totalorder %s31_s19, %s315_s29  ;;  %p321_p5 = scmp.lt.s32.totalorder %s315_s29, %s315_s29 }
   0xe   :  { %p322_p6 = por %p321_p5, %p320_p4 }
  0x10   :  { %p323_p7 = pnand %p322_p6, %p316_p3 }
  0x12   :  { %326 = shalt.err (!%p323_p7)
}
  0x13   :  { %33 = dma.hbm_to_vmem [thread:$0]  %s527_s1, 128, %s31_s19, [#allocation6]  }
  0x14   :  { %s327_s9 = scalar_lea.hbm %s526_s0, 128 }
  0x15   :  { %p328_p8 = scmp.ne.s32.totalorder %s526_s0, %s327_s9  ;;  %p331_p9 = scmp.lt.u32.totalorder %s327_s9, %s526_s0 }
  0x17   :  { %p333_p10 = pnand %p331_p9, %p328_p8 }
  0x19   :  { %336 = shalt.err (!%p333_p10)
}
  0x1a   :  { %s337_s14 = scalar_lea.vmem %s21_s21, 128  ;;  %p342_p12 = scmp.lt.s32.totalorder %s21_s21, %s21_s21 }
  0x1b   :  { %p338_p11 = scmp.ne.s32.totalorder %s21_s21, %s337_s14  ;;  %p343_p13 = scmp.lt.s32.totalorder %s337_s14, %s337_s14 }
  0x1d   :  { %p344_p0 = por %p343_p13, %p342_p12 }
  0x1f   :  { %p345_p1 = pnand %p344_p0, %p338_p11 }
  0x21   :  { %348 = shalt.err (!%p345_p1)
}
  0x22   :  { %23 = dma.hbm_to_vmem [thread:$0]  %s526_s0, 128, %s21_s21, [#allocation3]  }
  0x23   :  { %s425_s16 = smov [#allocation7]   ;;  %s349_s20 = scalar_lea.hbm %s528_s2, 256 }
  0x24   :  { %s39_s17 = sshll.u32 %s425_s16, 4  ;;  %p350_p2 = scmp.ne.s32.totalorder %s528_s2, %s349_s20  ;;  %s40_s17 = int_to_ptr.vmem [resolvable:$true] %s39_s17 }
  0x25   :  { %p353_p3 = scmp.lt.u32.totalorder %s349_s20, %s528_s2 }
  0x27   :  { %p355_p4 = pnand %p353_p3, %p350_p2 }
  0x29   :  { %358 = shalt.err (!%p355_p4)
}
  0x2a   :  { %s359_s26 = scalar_lea.vmem %s40_s17, 256  ;;  %p364_p6 = scmp.lt.s32.totalorder %s40_s17, %s40_s17 }
  0x2b   :  { %p360_p5 = scmp.ne.s32.totalorder %s40_s17, %s359_s26  ;;  %p365_p7 = scmp.lt.s32.totalorder %s359_s26, %s359_s26 }
  0x2d   :  { %p366_p8 = por %p365_p7, %p364_p6 }
  0x2f   :  { %p367_p9 = pnand %p366_p8, %p360_p5 }
  0x31   :  { %370 = shalt.err (!%p367_p9)
}
  0x32   :  { %s426_s0 = smov 128   ;;  %s427_s21 = smov 8  }
  0x33   :  { %45 = dma.hbm_to_vmem [thread:$0]  %s528_s2, 256, %s40_s17, [#allocation6], %s426_s0, %s426_s0, %s427_s21  }
  0x34   :  { %s428_s29 = smov [#allocation8]   ;;  %s371_s8 = scalar_lea.hbm %s530_s4, 512 }
  0x35   :  { %s53_s30 = sshll.u32 %s428_s29, 4  ;;  %p372_p10 = scmp.ne.s32.totalorder %s530_s4, %s371_s8  ;;  %s54_s30 = int_to_ptr.vmem [resolvable:$true] %s53_s30 }
  0x36   :  { %p375_p11 = scmp.lt.u32.totalorder %s371_s8, %s530_s4 }
  0x38   :  { %p377_p12 = pnand %p375_p11, %p372_p10 }
  0x3a   :  { %380 = shalt.err (!%p377_p12)
}
  0x3b   :  { %s381_s13 = scalar_lea.vmem %s54_s30, 512  ;;  %p386_p0 = scmp.lt.s32.totalorder %s54_s30, %s54_s30 }
  0x3c   :  { %p382_p13 = scmp.ne.s32.totalorder %s54_s30, %s381_s13  ;;  %p387_p1 = scmp.lt.s32.totalorder %s381_s13, %s381_s13 }
  0x3e   :  { %p388_p2 = por %p387_p1, %p386_p0 }
  0x40   :  { %p389_p3 = pnand %p388_p2, %p382_p13 }
  0x42   :  { %392 = shalt.err (!%p389_p3)
}
  0x43   :  { %59 = dma.hbm_to_vmem [thread:$0]  %s530_s4, 512, %s54_s30, [#allocation9], %s426_s0, %s426_s0, %s427_s21  }
  0x44   :  { %415 = dma.done.wait [#allocation3], 128  }
  0x45   :  { %416 = vsyncadd [#allocation3], 4294967168 }
  0x46   :  { %417 = dma.done.wait [#allocation6], 384  }
  0x47   :  { %418 = vsyncadd [#allocation6], 4294966912 }
  0x48   :  { %419 = dma.done.wait [#allocation9], 512  }
  0x49   :  { %420 = vsyncadd [#allocation9], 4294966784  ;;  %v429_v0 = vmov 0.0|0.0   ;;  %vm430_vm0 = vmmov 0   ;;  %v431_v1 = vmov 0.0   ;;  %v73_v2 = vld [vmem:[#allocation7] sm:$0xff] }
  0x4a   :  { %284 = vmatprep.subr.bf16.mxu0 %v429_v0  ;;  %270 = vmatprep.mubr.msk.f32.mxu0 %vm430_vm0, %v431_v1  ;;  %v74_v3 = vld [vmem:[#allocation7 + $0x8] sm:$0xff]  ;;  %v158_v5 = vld [vmem:[#allocation8] sm:$0xff]  ;;  %v159_v6 = vld [vmem:[#allocation8 + $0x8] sm:$0xff]  ;;  %vm82_vm1 = vcmask 130048   ;;  %vm162_vm2 = vcmask 261120   ;;  %s432_s15 = smov [#allocation10]  }
  0x4b   :  { %287 = vmatprep.subr.bf16.mxu1 %v429_v0  ;;  %281 = vmatprep.mubr.msk.f32.mxu1 %vm430_vm0, %v431_v1  ;;  %v285_v4 = vpack.c.bf16 %v74_v3, %v73_v2  ;;  %v160_v7 = vld [vmem:[#allocation8 + $0x10] sm:$0xff]  ;;  %v288_v8 = vpack.c.bf16 %v159_v6, %v158_v5  ;;  %v161_v9 = vld [vmem:[#allocation8 + $0x18] sm:$0xff]  ;;  %v72_v10 = vld [vmem:[#allocation2] sm:$0xff]  ;;  %s244_s16 = sshll.u32 %s432_s15, 4  ;;  %s245_s16 = int_to_ptr.vmem [resolvable:$true] %s244_s16 }
  0x4c   :  { %v291_v11 = vpack.c.bf16 %v161_v9, %v160_v7  ;;  %v157_v12 = vld [vmem:[#allocation5] sm:$0xff]  ;;  %v255_v13 = vld [vmem:[%s529_s3] ss:$0 sm:$0xff]  ;;  %s393_s17 = scalar_lea.vmem %s245_s16, 128  ;;  %p398_p5 = scmp.lt.s32.totalorder %s245_s16, %s245_s16 }
  0x4d   :  { %286 = vmatpush3.bf16.msra.mxu0 %v285_v4  ;;  %289 = vmatpush3.bf16.msra.mxu1 %v288_v8  ;;  %p394_p4 = scmp.ne.s32.totalorder %s245_s16, %s393_s17  ;;  %p399_p6 = scmp.lt.s32.totalorder %s393_s17, %s393_s17 }
  0x4e   :  { %290 = vmatprep.subr.bf16.mxu1 %v429_v0 }
  0x4f   :  { %p400_p7 = por %p399_p6, %p398_p5 }
  0x50   :  { %271 = vmatmul.mubr.msk.f32.vlgmr.msra.gmra.mrb[0].mxu0 %vm82_vm1, %v72_v10 }
  0x51   :  { %292 = vmatpush3.bf16.msra.mxu1 %v291_v11  ;;  %p401_p8 = pnand %p400_p7, %p394_p4 }
  0x54   :  { %282 = vmatmul.mubr.msk.f32.vlgmr.msra.gmra.mrb[0].mxu1 %vm162_vm2, %v157_v12 }
 0x123   :  { %v152_v14 = vpop.f32.mrb[0].mxu0 }
 0x124   :  { %v153_v15 = vadd.f32 %v255_v13, %v152_v14  ;;  %v272_v16 = vpop.f32.mrb[1].mxu0 }
 0x126   :  { %303 = vtanh.f32 %v153_v15 }
 0x127   :  { %v232_v17 = vpop.f32.mrb[0].mxu1 }
 0x128   :  { %v283_v18 = vpop.f32.mrb[1].mxu1 }
 0x130   :  { %v304_v19 = vpop.eup %303 }
 0x131   :  { %v236_v20 = vadd.f32 %v304_v19, %v232_v17 }
 0x133   :  { %237 = vst [vmem:[#allocation10] sm:$0xff] %v236_v20 }
 0x134   :  { %404 = shalt.err (!%p401_p8)
}
 0x135   :  { %s405_s19 = scalar_lea.hbm %s531_s5, 128 }
 0x136   :  { %p406_p9 = scmp.ne.s32.totalorder %s531_s5, %s405_s19  ;;  %p409_p10 = scmp.lt.u32.totalorder %s405_s19, %s531_s5 }
 0x138   :  { %p411_p11 = pnand %p409_p10, %p406_p9 }
 0x13a   :  { %414 = shalt.err (!%p411_p11)
}
 0x13b   :  { %247 = dma.vmem_to_hbm [thread:$0]  %s245_s16, 128, %s531_s5, [#allocation4]  }
 0x13c   :  { %421 = dma.done.wait [#allocation4], 128  }
 0x13d   :  { %422 = vsyncadd [#allocation4], 4294967168 }
 0x13e   :  { %251 = vsyncpa [#allocation3], 1 }
 0x13f   :  { %252 = vsyncpa [#allocation6], 1 }
 0x140   :  { %253 = vsyncpa [#allocation9], 1 }
 0x141   :  { %254 = vsyncpa [#allocation4], 1 }

</bundles_post_ra>
